<compile_context>
chip_gen: v7x
topology: tpu7x:2x2x1
jax: 0.10.0
libtpu: 0.0.40
codegen_flags: <defaults>
</compile_context>

<pallas_src>
import jax
import jax.numpy as jnp
from jax.experimental import pallas as pl
from jax.experimental.pallas import tpu as pltpu

_IN = 100      # fc1 input features (x streamed unpadded at this width)
_DP = 128      # padded hidden width (50 / 10 -> 128, lane-aligned)
_TM_MAX = 4096 # max rows per block (block = TM*100*4 B ~ 1.6 MiB at 4096)


def _mlp_kernel(x_ref, w1_ref, b1_ref, w2_ref, b2_ref, w3_ref, b3_ref, o_ref):
    # fc1: MXU with bf16 operands (cast on-chip), f32 accumulate; bias/ReLU f32.
    x = x_ref[...].astype(jnp.bfloat16)                                  # (TM, 100)
    h1 = jnp.dot(x, w1_ref[...], preferred_element_type=jnp.float32)    # (TM, 128)
    h1 = jnp.maximum(h1 + b1_ref[...], 0.0)
    # fc2
    h2 = jnp.dot(h1.astype(jnp.bfloat16), w2_ref[...],
                 preferred_element_type=jnp.float32)                    # (TM, 128)
    h2 = jnp.maximum(h2 + b2_ref[...], 0.0)
    # fc3 (10 -> 1): VPU multiply + lane (XLU) reduction instead of a 128x1 MXU op.
    z = jnp.sum(h2 * w3_ref[...], axis=-1, keepdims=True) + b3_ref[...]  # (TM, 1)
    # Numerically stable sigmoid: 0.5 * (1 + tanh(z/2)) (tanh runs on the EUP).
    o_ref[...] = 0.5 * (jnp.tanh(0.5 * z) + 1.0)


def _round_up(a, m):
    return (a + m - 1) // m * m


def _choose_tm(batch):
    # Big blocks amortize the ~0.35us/step pipeline overhead; >=2 blocks lets the
    # "parallel" grid axis shard across both TensorCores on v7x.
    if batch <= 32:
        return max(_round_up(batch, 8), 8)
    return min(_TM_MAX, _round_up(pl.cdiv(batch, 2), 16))


def _pad2(a, rows, cols, dtype=jnp.float32):
    out = jnp.zeros((rows, cols), dtype)
    return out.at[: a.shape[0], : a.shape[1]].set(a.astype(dtype))


def _prepare_params(params):
    """Pad the (tiny) weights to lane-aligned shapes.  x itself is never padded."""
    w1, b1, w2, b2, w3, b3 = params
    w1_p = _pad2(w1, _IN, _DP, jnp.bfloat16)       # (100, 128): full K dim, padded N
    w2_p = _pad2(w2, _DP, _DP, jnp.bfloat16)       # (128, 128)
    b1_p = _pad2(b1.reshape(1, -1), 1, _DP)        # (1, 128) f32
    b2_p = _pad2(b2.reshape(1, -1), 1, _DP)        # (1, 128) f32
    w3_p = _pad2(w3.reshape(1, -1), 1, _DP)        # (1, 128) fc3 weight row, f32
    b3_p = b3.reshape(1, 1).astype(jnp.float32)    # (1, 1)
    return w1_p, b1_p, w2_p, b2_p, w3_p, b3_p


@jax.jit
def yug_forward(x, params):
    B, F = x.shape
    assert F == _IN, f"expected {_IN} input features, got {F}"
    w1_p, b1_p, w2_p, b2_p, w3_p, b3_p = _prepare_params(params)

    TM = _choose_tm(B)
    grid = (pl.cdiv(B, TM),)
    const = lambda i: (0, 0)

    x_bytes = x.size * x.dtype.itemsize
    w_bytes = ((w1_p.size + w2_p.size) * 2
               + (b1_p.size + b2_p.size + w3_p.size + b3_p.size) * 4)
    flops = 2 * B * (_IN * _DP + _DP * _DP) + 5 * B * _DP

    out = pl.pallas_call(
        _mlp_kernel,
        out_shape=jax.ShapeDtypeStruct((B, 1), jnp.float32),
        grid=grid,
        in_specs=[
            pl.BlockSpec((TM, _IN), lambda i: (i, 0)),   # x: streamed, unpadded
            pl.BlockSpec((_IN, _DP), const),             # w1 (bf16, VMEM-resident)
            pl.BlockSpec((1, _DP), const),               # b1
            pl.BlockSpec((_DP, _DP), const),             # w2 (bf16, VMEM-resident)
            pl.BlockSpec((1, _DP), const),               # b2
            pl.BlockSpec((1, _DP), const),               # w3 row (f32)
            pl.BlockSpec((1, 1), const),                 # b3
        ],
        out_specs=pl.BlockSpec((TM, 1), lambda i: (i, 0)),
        compiler_params=pltpu.CompilerParams(
            dimension_semantics=("parallel",),           # megacore / dual-TC on v7x
            vmem_limit_bytes=32 << 20,                   # safe on v7x's 64 MiB VMEM
        ),
        cost_estimate=pl.CostEstimate(
            flops=flops, transcendentals=B,
            bytes_accessed=x_bytes + w_bytes + B * 4),
    )(x, w1_p, b1_p, w2_p, b2_p, w3_p, b3_p)
    return out


def init_params(key):
    # Deterministic init mimicking nn.Linear's U(-1/sqrt(fan_in), 1/sqrt(fan_in)).
    # Weights stored (in, out) so forward is x @ W + b (== PyTorch x @ W.T + b).
    dims = [(100, 50), (50, 10), (10, 1)]
    params = []
    for fan_in, fan_out in dims:
        kw, kb, key = jax.random.split(key, 3)
        bound = 1.0 / jnp.sqrt(fan_in)
        w = jax.random.uniform(kw, (fan_in, fan_out), jnp.float32, -bound, bound)
        b = jax.random.uniform(kb, (fan_out,), jnp.float32, -bound, bound)
        params += [w, b]
    return tuple(params)


def matched_reference(x, params):
    """Pure-JAX model of the kernel's exact numerics (bf16 MXU operands, f32 accum)."""
    w1, b1, w2, b2, w3, b3 = params
    h1 = jnp.maximum(
        jnp.dot(x.astype(jnp.bfloat16), w1.astype(jnp.bfloat16),
                preferred_element_type=jnp.float32) + b1, 0.0)
    h2 = jnp.maximum(
        jnp.dot(h1.astype(jnp.bfloat16), w2.astype(jnp.bfloat16),
                preferred_element_type=jnp.float32) + b2, 0.0)
    z = jnp.sum(h2 * w3.T, axis=-1, keepdims=True) + b3   # f32 VPU path, like kernel
    return 0.5 * (jnp.tanh(0.5 * z) + 1.0)


def reference_forward(x, params):
    """Full-f32 PyTorch-equivalent reference."""
    w1, b1, w2, b2, w3, b3 = params
    h1 = jax.nn.relu(x @ w1 + b1)
    h2 = jax.nn.relu(h1 @ w2 + b2)
    return jax.nn.sigmoid(h2 @ w3 + b3)


if __name__ == "__main__":
    key = jax.random.PRNGKey(0)
    kx, kp = jax.random.split(key)
    B = 8
    x = jax.random.normal(kx, (B, _IN), jnp.float32)
    params = init_params(kp)

    out = jax.block_until_ready(yug_forward(x, params))
    ref_matched = matched_reference(x, params)   # same bf16/f32 numerics as kernel
    ref_f32 = reference_forward(x, params)       # pure-f32 PyTorch semantics

    assert out.shape == (B, 1), out.shape
    assert jnp.allclose(out, ref_matched, atol=2e-3, rtol=0.0), (out, ref_matched)
    assert jnp.allclose(out, ref_f32, atol=2e-2, rtol=0.0), (out, ref_f32)
    print("KERNEL_OK")
</pallas_src>

<mosaic_0001>
module attributes {stable_mosaic.version = 11 : i64} {
  func.func @_mlp_kernel(%arg0: i32, %arg1: memref<8x100xf32, #tpu.memory_space<vmem>>, %arg2: memref<100x128xbf16, #tpu.memory_space<vmem>>, %arg3: memref<1x128xf32, #tpu.memory_space<vmem>>, %arg4: memref<128x128xbf16, #tpu.memory_space<vmem>>, %arg5: memref<1x128xf32, #tpu.memory_space<vmem>>, %arg6: memref<1x128xf32, #tpu.memory_space<vmem>>, %arg7: memref<1x1xf32, #tpu.memory_space<vmem>>, %arg8: memref<8x1xf32, #tpu.memory_space<vmem>>) attributes {dimension_semantics = [#tpu.dimension_semantics<parallel>], iteration_bounds = array<i64: 1>, scalar_prefetch = 0 : i64, scratch_operands = 0 : i64, tpu.core_type = #tpu.core_type<tc>, window_params = [{transform_indices = @transform_0, window_bounds = array<i64: 8, 100>}, {pipeline_mode = #tpu.pipeline_mode<synchronous>, transform_indices = @transform_1, window_bounds = array<i64: 100, 128>}, {pipeline_mode = #tpu.pipeline_mode<synchronous>, transform_indices = @transform_2, window_bounds = array<i64: 1, 128>}, {pipeline_mode = #tpu.pipeline_mode<synchronous>, transform_indices = @transform_3, window_bounds = array<i64: 128, 128>}, {pipeline_mode = #tpu.pipeline_mode<synchronous>, transform_indices = @transform_4, window_bounds = array<i64: 1, 128>}, {pipeline_mode = #tpu.pipeline_mode<synchronous>, transform_indices = @transform_5, window_bounds = array<i64: 1, 128>}, {pipeline_mode = #tpu.pipeline_mode<synchronous>, transform_indices = @transform_6, window_bounds = array<i64: 1, 1>}, {transform_indices = @transform_7, window_bounds = array<i64: 8, 1>}]} {
    %c0 = arith.constant 0 : index
    %c0_0 = arith.constant 0 : index
    %0 = vector.load %arg1[%c0, %c0_0] : memref<8x100xf32, #tpu.memory_space<vmem>>, vector<8x100xf32>
    %1 = arith.truncf %0 : vector<8x100xf32> to vector<8x100xbf16>
    %c0_1 = arith.constant 0 : index
    %c0_2 = arith.constant 0 : index
    %2 = vector.load %arg2[%c0_1, %c0_2] : memref<100x128xbf16, #tpu.memory_space<vmem>>, vector<100x128xbf16>
    %cst = arith.constant dense<0.000000e+00> : vector<8x128xf32>
    %3 = tpu.matmul %1, %2, %cst {dimension_numbers = #tpu.dot_dimension_numbers<[1], [0], [0], [1], [0, 0, 1, 1], [], []>} : vector<8x100xbf16>, vector<100x128xbf16>, vector<8x128xf32> -> vector<8x128xf32>
    %c0_3 = arith.constant 0 : index
    %c0_4 = arith.constant 0 : index
    %4 = vector.load %arg3[%c0_3, %c0_4] : memref<1x128xf32, #tpu.memory_space<vmem>>, vector<1x128xf32>
    %5 = vector.broadcast %4 : vector<1x128xf32> to vector<8x128xf32>
    %6 = arith.addf %3, %5 : vector<8x128xf32>
    %cst_5 = arith.constant 0.000000e+00 : f32
    %7 = vector.broadcast %cst_5 : f32 to vector<8x128xf32>
    %8 = arith.maximumf %6, %7 : vector<8x128xf32>
    %9 = arith.truncf %8 : vector<8x128xf32> to vector<8x128xbf16>
    %c0_6 = arith.constant 0 : index
    %c0_7 = arith.constant 0 : index
    %10 = vector.load %arg4[%c0_6, %c0_7] : memref<128x128xbf16, #tpu.memory_space<vmem>>, vector<128x128xbf16>
    %cst_8 = arith.constant dense<0.000000e+00> : vector<8x128xf32>
    %11 = tpu.matmul %9, %10, %cst_8 {dimension_numbers = #tpu.dot_dimension_numbers<[1], [0], [0], [1], [0, 0, 1, 1], [], []>} : vector<8x128xbf16>, vector<128x128xbf16>, vector<8x128xf32> -> vector<8x128xf32>
    %c0_9 = arith.constant 0 : index
    %c0_10 = arith.constant 0 : index
    %12 = vector.load %arg5[%c0_9, %c0_10] : memref<1x128xf32, #tpu.memory_space<vmem>>, vector<1x128xf32>
    %13 = vector.broadcast %12 : vector<1x128xf32> to vector<8x128xf32>
    %14 = arith.addf %11, %13 : vector<8x128xf32>
    %cst_11 = arith.constant 0.000000e+00 : f32
    %15 = vector.broadcast %cst_11 : f32 to vector<8x128xf32>
    %16 = arith.maximumf %14, %15 : vector<8x128xf32>
    %c0_12 = arith.constant 0 : index
    %c0_13 = arith.constant 0 : index
    %17 = vector.load %arg6[%c0_12, %c0_13] : memref<1x128xf32, #tpu.memory_space<vmem>>, vector<1x128xf32>
    %18 = vector.broadcast %17 : vector<1x128xf32> to vector<8x128xf32>
    %19 = arith.mulf %16, %18 : vector<8x128xf32>
    %cst_14 = arith.constant dense<0.000000e+00> : vector<8xf32>
    %20 = vector.multi_reduction <add>, %19, %cst_14 [1] : vector<8x128xf32> to vector<8xf32>
    %21 = vector.shape_cast %20 : vector<8xf32> to vector<8x1xf32>
    %c0_15 = arith.constant 0 : index
    %c0_16 = arith.constant 0 : index
    %22 = vector.load %arg7[%c0_15, %c0_16] : memref<1x1xf32, #tpu.memory_space<vmem>>, vector<1x1xf32>
    %23 = vector.broadcast %22 : vector<1x1xf32> to vector<8x1xf32>
    %24 = arith.addf %21, %23 : vector<8x1xf32>
    %cst_17 = arith.constant 5.000000e-01 : f32
    %25 = vector.broadcast %cst_17 : f32 to vector<8x1xf32>
    %26 = arith.mulf %25, %24 : vector<8x1xf32>
    %27 = math.tanh %26 : vector<8x1xf32>
    %cst_18 = arith.constant 1.000000e+00 : f32
    %28 = vector.broadcast %cst_18 : f32 to vector<8x1xf32>
    %29 = arith.addf %27, %28 : vector<8x1xf32>
    %cst_19 = arith.constant 5.000000e-01 : f32
    %30 = vector.broadcast %cst_19 : f32 to vector<8x1xf32>
    %31 = arith.mulf %30, %29 : vector<8x1xf32>
    %c0_20 = arith.constant 0 : index
    %c0_21 = arith.constant 0 : index
    %32 = vector.load %arg8[%c0_20, %c0_21] : memref<8x1xf32, #tpu.memory_space<vmem>>, vector<8x1xf32>
    tpu.vector_store %arg8[%c0_20, %c0_21], %31 {strides = array<i32>} : memref<8x1xf32, #tpu.memory_space<vmem>>, vector<8x1xf32>,
    return
  }
  func.func @transform_0(%arg0: i32) -> (i32, i32) {
    %c0_i32 = arith.constant 0 : i32
    %c0_i32_0 = arith.constant 0 : i32
    return %arg0, %c0_i32 : i32, i32
  }
  func.func @transform_1(%arg0: i32) -> (i32, i32) {
    %c0_i32 = arith.constant 0 : i32
    %c0_i32_0 = arith.constant 0 : i32
    %c0_i32_1 = arith.constant 0 : i32
    return %c0_i32, %c0_i32_0 : i32, i32
  }
  func.func @transform_2(%arg0: i32) -> (i32, i32) {
    %c0_i32 = arith.constant 0 : i32
    %c0_i32_0 = arith.constant 0 : i32
    %c0_i32_1 = arith.constant 0 : i32
    return %c0_i32, %c0_i32_0 : i32, i32
  }
  func.func @transform_3(%arg0: i32) -> (i32, i32) {
    %c0_i32 = arith.constant 0 : i32
    %c0_i32_0 = arith.constant 0 : i32
    %c0_i32_1 = arith.constant 0 : i32
    return %c0_i32, %c0_i32_0 : i32, i32
  }
  func.func @transform_4(%arg0: i32) -> (i32, i32) {
    %c0_i32 = arith.constant 0 : i32
    %c0_i32_0 = arith.constant 0 : i32
    %c0_i32_1 = arith.constant 0 : i32
    return %c0_i32, %c0_i32_0 : i32, i32
  }
  func.func @transform_5(%arg0: i32) -> (i32, i32) {
    %c0_i32 = arith.constant 0 : i32
    %c0_i32_0 = arith.constant 0 : i32
    %c0_i32_1 = arith.constant 0 : i32
    return %c0_i32, %c0_i32_0 : i32, i32
  }
  func.func @transform_6(%arg0: i32) -> (i32, i32) {
    %c0_i32 = arith.constant 0 : i32
    %c0_i32_0 = arith.constant 0 : i32
    %c0_i32_1 = arith.constant 0 : i32
    return %c0_i32, %c0_i32_0 : i32, i32
  }
  func.func @transform_7(%arg0: i32) -> (i32, i32) {
    %c0_i32 = arith.constant 0 : i32
    %c0_i32_0 = arith.constant 0 : i32
    return %arg0, %c0_i32 : i32, i32
  }
}

</mosaic_0001>

<bundles_post_ra>
// kernel: yug_forward.1
= control target key start
LH: loop header
LB: loop body
LE: loop exit
PB: predicated region body
PF: predicated region fallthrough
CT: control target
= control target key end

     0   :  { %v374_v0 = vmov 0.0   ;;  %vm375_vm0 = vmmov 0   ;;  %vm94_vm1 = vcmask 1041408   ;;  %vm90_vm2 = vcmask 818176   ;;  %s479_s1 = inlined_call_operand.vmem [shape: bf16[100,128], index: 1, kind: input, shape index: {}]   ;;  %s480_s3 = inlined_call_operand.vmem [shape: bf16[128,128], index: 3, kind: input, shape index: {}]   ;;  %s481_s0 = inlined_call_operand.vmem [shape: f32[8,100], index: 0, kind: input, shape index: {}]   ;;  %s482_s2 = inlined_call_operand.vmem [shape: f32[1,128], index: 2, kind: input, shape index: {}]   ;;  %s483_s6 = inlined_call_operand.<no memory space> [shape: f32[1,1], index: 6, kind: input, shape index: {}]   ;;  %s484_s4 = inlined_call_operand.vmem [shape: f32[1,128], index: 4, kind: input, shape index: {}]   ;;  %s485_s5 = inlined_call_operand.vmem [shape: f32[1,128], index: 5, kind: input, shape index: {}]   ;;  %s486_s7 = inlined_call_operand.vmem [shape: f32[8,1], index: 7, kind: output, shape index: {}]  }
   0x1   :  { %317 = vmatprep.subr.bf16.mxu0 %v374_v0  ;;  %v357_v1 = vld [vmem:[%s479_s1] sm:$0xff]   ;;  %331 = vmatprep.mubr.msk.bf16.mxu0 %vm375_vm0, %v374_v0  ;;  %v358_v2 = vld [vmem:[%s479_s1 + $0x8] sm:$0xff]   ;;  %v359_v3 = vld [vmem:[%s479_s1 + $0x10] sm:$0xff]   ;;  %v12_v27 = vstv %s483_s6  ;;  %vm274_vm3 = vcmask 7168  }
   0x2   :  { %335 = vmatprep.subr.bf16.mxu1 %v374_v0  ;;  %351 = vmatprep.mubr.msk.bf16.mxu1 %vm375_vm0, %v374_v0  ;;  %v364_v4 = vld [vmem:[%s480_s3] sm:$0xff]   ;;  %v365_v5 = vld [vmem:[%s480_s3 + $0x8] sm:$0xff]   ;;  %v360_v6 = vld [vmem:[%s479_s1 + $0x18] sm:$0xff]   ;;  %13 = vst [vmem:[#allocation2] sm:$0x1] %v12_v27 }
   0x3   :  { %318 = vmatpush3.bf16.msra.mxu0 %v357_v1  ;;  %336 = vmatpush3.bf16.msra.mxu1 %v364_v4  ;;  %v366_v7 = vld [vmem:[%s480_s3 + $0x10] sm:$0xff]   ;;  %v361_v8 = vld [vmem:[%s479_s1 + $0x20] sm:$0xff]   ;;  %v367_v9 = vld [vmem:[%s480_s3 + $0x18] sm:$0xff]  }
   0x4   :  { %319 = vmatprep.subr.bf16.mxu0 %v374_v0  ;;  %337 = vmatprep.subr.bf16.mxu1 %v374_v0  ;;  %v362_v10 = vld [vmem:[%s479_s1 + $0x28] sm:$0xff]   ;;  %v363_v11 = vld [vmem:[%s479_s1 + $0x30] ss:$0 sps:$4 sm:$0x33]   ;;  %v368_v12 = vld [vmem:[%s480_s3 + $0x20] sm:$0xff]  }
   0x5   :  { %v29_v13 = vld [vmem:[%s481_s0] sm:$0xff]  ;;  %v96_v14 = vsel %vm94_vm1, %v363_v11, 0  ;;  %v369_v16 = vld [vmem:[%s480_s3 + $0x28] sm:$0xff]   ;;  %v370_v17 = vld [vmem:[%s480_s3 + $0x30] sm:$0xff]  }
   0x6   :  { %v30_v15 = vpack.c.bf16 %v29_v13, %v29_v13  ;;  %v371_v18 = vld [vmem:[%s480_s3 + $0x38] sm:$0xff]   ;;  %v280_v19 = vld [vmem:[%s482_s2] ss:$0 sm:$0xff] }
   0x7   :  { %320 = vmatpush3.bf16.msra.mxu0 %v358_v2  ;;  %338 = vmatpush3.bf16.msra.mxu1 %v365_v5  ;;  %v289_v28 = vld [vmem:[%s484_s4] ss:$0 sm:$0xff] }
   0x8   :  { %321 = vmatprep.subr.bf16.mxu0 %v374_v0  ;;  %339 = vmatprep.subr.bf16.mxu1 %v374_v0  ;;  %v298_v33 = vld [vmem:[%s485_s5] ss:$0 sm:$0xff] }
   0x9   :  { %v299_v37 = vld [vmem:[#allocation2] ss:$0 sm:$0xff] }
   0xb   :  { %322 = vmatpush3.bf16.msra.mxu0 %v359_v3  ;;  %340 = vmatpush3.bf16.msra.mxu1 %v366_v7 }
   0xc   :  { %323 = vmatprep.subr.bf16.mxu0 %v374_v0  ;;  %341 = vmatprep.subr.bf16.mxu1 %v374_v0 }
   0xf   :  { %324 = vmatpush3.bf16.msra.mxu0 %v360_v6  ;;  %342 = vmatpush3.bf16.msra.mxu1 %v367_v9 }
  0x10   :  { %325 = vmatprep.subr.bf16.mxu0 %v374_v0  ;;  %343 = vmatprep.subr.bf16.mxu1 %v374_v0 }
  0x13   :  { %326 = vmatpush3.bf16.msra.mxu0 %v361_v8  ;;  %344 = vmatpush3.bf16.msra.mxu1 %v368_v12 }
  0x14   :  { %327 = vmatprep.subr.bf16.mxu0 %v374_v0  ;;  %345 = vmatprep.subr.bf16.mxu1 %v374_v0 }
  0x17   :  { %328 = vmatpush3.bf16.msra.mxu0 %v362_v10  ;;  %346 = vmatpush3.bf16.msra.mxu1 %v369_v16 }
  0x18   :  { %329 = vmatprep.subr.bf16.mxu0 %v374_v0  ;;  %347 = vmatprep.subr.bf16.mxu1 %v374_v0 }
  0x1b   :  { %330 = vmatpush3.bf16.msra.mxu0 %v96_v14  ;;  %348 = vmatpush3.bf16.msra.mxu1 %v370_v17 }
  0x1c   :  { %349 = vmatprep.subr.bf16.mxu1 %v374_v0 }
  0x1e   :  { %332 = vmatmul.mubr.msk.bf16.vlgmr.msra.gmra.mrb[0].mxu0 %vm90_vm2, %v30_v15 }
  0x1f   :  { %350 = vmatpush3.bf16.msra.mxu1 %v371_v18 }
  0xf1   :  { %v132_v20 = vpop.f32.mrb[0].mxu0 }
  0xf2   :  { %v133_v21 = vadd.f32 %v280_v19, %v132_v20  ;;  %v333_v22 = vpop.f32.mrb[1].mxu0 }
  0xf3   :  { %v135_v23 = vpop.f32.mrb[2].mxu0 }
  0xf4   :  { %v138_v24 = vmax.f32 %v133_v21, 0.0  ;;  %v334_v25 = vpop.f32.mrb[3].mxu0 }
  0xf6   :  { %v139_v26 = vpack.c.bf16 %v138_v24, %v138_v24 }
  0xf8   :  { %352 = vmatmul.mubr.bf16.vlgmr.msra.gmra.mrb[0].mxu1 %v139_v26 }
 0x1cb   :  { %v245_v29 = vpop.f32.mrb[0].mxu1 }
 0x1cc   :  { %v246_v30 = vadd.f32 %v289_v28, %v245_v29  ;;  %v353_v31 = vpop.f32.mrb[1].mxu1 }
 0x1cd   :  { %v248_v32 = vpop.f32.mrb[2].mxu1 }
 0x1ce   :  { %v251_v34 = vmax.f32 %v246_v30, 0.0  ;;  %v354_v35 = vpop.f32.mrb[3].mxu1 }
 0x1d0   :  { %v259_v36 = vmul.f32 %v298_v33, %v251_v34 }
 0x1d2   :  { %260 = vadd.xlane.f32.xlu0 %v259_v36 }
 0x25f   :  { %v261_v38 = vpop.xlane.xlu0 %260 }
 0x260   :  { %v269_v39 = vadd.f32 %v299_v37, %v261_v38 }
 0x262   :  { %v270_v40 = vmul.f32 0.5, %v269_v39 }
 0x264   :  { %372 = vtanh.f32 %v270_v40 }
 0x26e   :  { %v373_v41 = vpop.eup %372 }
 0x26f   :  { %v272_v42 = vadd.f32 1.0, %v373_v41 }
 0x271   :  { %v273_v43 = vmul.f32 0.5, %v272_v42 }
 0x273   :  { %275 = vst.msk [vmem:[%s486_s7] sm:$0xff] %vm274_vm3, %v273_v43 }

</bundles_post_ra>
